<compile_context>
chip_gen: v5e
topology: v5e:2x2
jax: 0.10.0
libtpu: 0.0.40
codegen_flags: <defaults>
</compile_context>

<pallas_src>
import functools

import jax
import jax.numpy as jnp
from jax.experimental import pallas as pl
from jax.experimental.pallas import tpu as pltpu

ALPHA = 0.25
GAMMA = 2.0
LANE = 128
SUBLANE = 8


def _ce_partial_kernel(logits_ref, tgt_ref, psum_ref, *, valid_hw, tile_hw,
                       needs_mask, out_r):
    # logits_ref: (1, C, tile_r, 128) float  |  tgt_ref: (1, 1, tile_r, 128) int32
    x = logits_ref[...].astype(jnp.float32)
    tgt = tgt_ref[...]

    # Numerically stable log-sum-exp over the class axis (dim 1, a major dim:
    # pure elementwise VPU max/add + EUP exp/log across per-class vreg slabs).
    m = jnp.max(x, axis=1, keepdims=True)                                   # (1,1,tr,128)
    lse = jnp.log(jnp.sum(jnp.exp(x - m), axis=1, keepdims=True)) + m        # (1,1,tr,128)

    # Picked logit via iota-compare (no one-hot ever touches HBM).
    cls = jax.lax.broadcasted_iota(jnp.int32, x.shape, 1)                    # (1,C,tr,128)
    picked = jnp.sum(jnp.where(cls == tgt, x, 0.0), axis=1, keepdims=True)   # (1,1,tr,128)

    ce = lse - picked                                                        # (1,1,tr,128)

    if needs_mask:
        # Zero out padded pixel positions: lane padding (HW -> mult. of 128)
        # and Pallas partial trailing row-tiles (undefined data, masked here).
        row = jax.lax.broadcasted_iota(jnp.int32, ce.shape, 2)
        lane = jax.lax.broadcasted_iota(jnp.int32, ce.shape, 3)
        col = pl.program_id(1) * tile_hw + row * LANE + lane
        ce = jnp.where(col < valid_hw, ce, 0.0)

    tr = ce.shape[2]
    if out_r == SUBLANE:
        # Collapse the row-tile axis with vreg-wise adds only; keep a dense
        # (8,128) partial so no cross-lane XLU reduce happens inside the kernel.
        partial = jnp.sum(ce.reshape(tr // SUBLANE, SUBLANE, LANE), axis=0)  # (8,128)
        psum_ref[...] = partial.reshape(1, 1, SUBLANE, LANE)
    else:
        # Tiny row dim (R < 8): a single cheap sublane reduce.
        psum_ref[...] = jnp.sum(ce, axis=2, keepdims=True)                   # (1,1,1,128)


def focal_loss(inputs, targets, *, max_block_bytes=4 << 20):
    """inputs: (B, C, H, W) float logits; targets: (B, H, W) int class ids."""
    B, C, H, W = inputs.shape
    HW = H * W
    n_pixels = B * HW

    # ---- layout: pixels live on (rows-of-128) x 128 lanes; C is a major dim ----
    R = pl.cdiv(HW, LANE)          # rows of 128 pixels
    lane_pad = R * LANE - HW       # pad only to a multiple of 128 (reshape requires it)

    logits = inputs.reshape(B, C, HW).astype(jnp.float32)
    tgt = targets.reshape(B, 1, HW).astype(jnp.int32)
    if lane_pad:
        # Only happens when H*W is not a multiple of 128.
        logits = jnp.pad(logits, ((0, 0), (0, 0), (0, lane_pad)))
        tgt = jnp.pad(tgt, ((0, 0), (0, 0), (0, lane_pad)))
    logits = logits.reshape(B, C, R, LANE)
    tgt = tgt.reshape(B, 1, R, LANE)

    # ---- tiling: biggest row-tile (multiple of 8) that keeps blocks ~4 MiB ----
    bytes_per_row = C * LANE * 4
    max_tile_r = max(SUBLANE, (max_block_bytes // bytes_per_row) // SUBLANE * SUBLANE)
    if R < SUBLANE:
        tile_r, out_r = R, 1                      # full (small) dim block; no padding
    else:
        tile_r, out_r = min(max_tile_r, (R // SUBLANE) * SUBLANE), SUBLANE
    n_tiles = pl.cdiv(R, tile_r)
    tile_hw = tile_r * LANE
    needs_mask = (lane_pad != 0) or (n_tiles * tile_r != R)

    kernel = functools.partial(
        _ce_partial_kernel, valid_hw=HW, tile_hw=tile_hw,
        needs_mask=needs_mask, out_r=out_r,
    )

    partials = pl.pallas_call(
        kernel,
        out_shape=jax.ShapeDtypeStruct((B, n_tiles, out_r, LANE), jnp.float32),
        grid_spec=pltpu.PrefetchScalarGridSpec(
            num_scalar_prefetch=0,
            grid=(B, n_tiles),
            in_specs=[
                pl.BlockSpec((1, C, tile_r, LANE), lambda b, t: (b, 0, t, 0)),
                pl.BlockSpec((1, 1, tile_r, LANE), lambda b, t: (b, 0, t, 0)),
            ],
            out_specs=pl.BlockSpec((1, 1, out_r, LANE), lambda b, t: (b, t, 0, 0)),
        ),
        compiler_params=pltpu.CompilerParams(
            dimension_semantics=("parallel", "parallel"),
        ),
    )(logits, tgt)

    # Tiny scalar epilogue (mean CE + focal transform), done in plain JAX.
    ce_mean = jnp.sum(partials) / jnp.float32(n_pixels)
    pt = jnp.exp(-ce_mean)
    one_minus_pt = 1.0 - pt
    # gamma == 2 -> explicit square (avoid pow lowering)
    return ALPHA * jnp.square(one_minus_pt) * ce_mean


def _reference_focal_loss(inputs, targets):
    # pure-JAX reference mirroring F.cross_entropy(reduction='mean') + focal transform
    B, C, H, W = inputs.shape
    logits = jnp.transpose(inputs, (0, 2, 3, 1)).reshape(-1, C)
    logp = jax.nn.log_softmax(logits, axis=-1)
    ce = -jnp.take_along_axis(logp, targets.reshape(-1, 1), axis=-1).mean()
    pt = jnp.exp(-ce)
    return ALPHA * (1.0 - pt) ** GAMMA * ce


if __name__ == "__main__":
    key = jax.random.PRNGKey(0)
    k1, k2 = jax.random.split(key)

    B, C, H, W = 2, 4, 16, 16
    x = jax.random.normal(k1, (B, C, H, W), dtype=jnp.float32)
    y = jax.random.randint(k2, (B, H, W), 0, C, dtype=jnp.int32)

    loss = focal_loss(x, y)
    jax.block_until_ready(loss)

    ref = _reference_focal_loss(x, y)
    assert jnp.allclose(loss, ref, rtol=1e-5, atol=1e-6), (loss, ref)

    print("KERNEL_OK")
</pallas_src>

<mosaic_0001>
module attributes {stable_mosaic.version = 11 : i64} {
  func.func @_ce_partial_kernel(%arg0: i32, %arg1: i32, %arg2: memref<1x4x2x128xf32, #tpu.memory_space<vmem>>, %arg3: memref<1x1x2x128xi32, #tpu.memory_space<vmem>>, %arg4: memref<1x1x1x128xf32, #tpu.memory_space<vmem>>) attributes {dimension_semantics = [#tpu.dimension_semantics<parallel>, #tpu.dimension_semantics<parallel>], iteration_bounds = array<i64: 2, 1>, scalar_prefetch = 0 : i64, scratch_operands = 0 : i64, tpu.core_type = #tpu.core_type<tc>, window_params = [{transform_indices = @transform_0, window_bounds = array<i64: 1, 4, 2, 128>}, {transform_indices = @transform_1, window_bounds = array<i64: 1, 1, 2, 128>}, {transform_indices = @transform_2, window_bounds = array<i64: 1, 1, 1, 128>}]} {
    %c0 = arith.constant 0 : index
    %c0_0 = arith.constant 0 : index
    %c0_1 = arith.constant 0 : index
    %c0_2 = arith.constant 0 : index
    %0 = vector.load %arg2[%c0, %c0_0, %c0_1, %c0_2] : memref<1x4x2x128xf32, #tpu.memory_space<vmem>>, vector<1x4x2x128xf32>
    %c0_3 = arith.constant 0 : index
    %c0_4 = arith.constant 0 : index
    %c0_5 = arith.constant 0 : index
    %c0_6 = arith.constant 0 : index
    %1 = vector.load %arg3[%c0_3, %c0_4, %c0_5, %c0_6] : memref<1x1x2x128xi32, #tpu.memory_space<vmem>>, vector<1x1x2x128xi32>
    %cst = arith.constant dense<0xFF800000> : vector<1x2x128xf32>
    %2 = vector.multi_reduction <maximumf>, %0, %cst [1] : vector<1x4x2x128xf32> to vector<1x2x128xf32>
    %3 = vector.shape_cast %2 : vector<1x2x128xf32> to vector<1x1x2x128xf32>
    %4 = vector.broadcast %3 : vector<1x1x2x128xf32> to vector<1x4x2x128xf32>
    %5 = arith.subf %0, %4 : vector<1x4x2x128xf32>
    %6 = math.exp %5 : vector<1x4x2x128xf32>
    %cst_7 = arith.constant dense<0.000000e+00> : vector<1x2x128xf32>
    %7 = vector.multi_reduction <add>, %6, %cst_7 [1] : vector<1x4x2x128xf32> to vector<1x2x128xf32>
    %8 = vector.shape_cast %7 : vector<1x2x128xf32> to vector<1x1x2x128xf32>
    %9 = math.log %8 : vector<1x1x2x128xf32>
    %10 = arith.addf %9, %3 : vector<1x1x2x128xf32>
    %11 = tpu.iota {dimensions = array<i32: 1>} : vector<1x4x2x128xi32>
    %12 = vector.broadcast %1 : vector<1x1x2x128xi32> to vector<1x4x2x128xi32>
    %13 = arith.cmpi eq, %11, %12 : vector<1x4x2x128xi32>
    %cst_8 = arith.constant 0.000000e+00 : f32
    %14 = vector.broadcast %cst_8 : f32 to vector<1x4x2x128xf32>
    %15 = arith.select %13, %0, %14 : vector<1x4x2x128xi1>, vector<1x4x2x128xf32>
    %cst_9 = arith.constant dense<0.000000e+00> : vector<1x2x128xf32>
    %16 = vector.multi_reduction <add>, %15, %cst_9 [1] : vector<1x4x2x128xf32> to vector<1x2x128xf32>
    %17 = vector.shape_cast %16 : vector<1x2x128xf32> to vector<1x1x2x128xf32>
    %18 = arith.subf %10, %17 : vector<1x1x2x128xf32>
    %cst_10 = arith.constant dense<0.000000e+00> : vector<1x1x128xf32>
    %19 = vector.multi_reduction <add>, %18, %cst_10 [2] : vector<1x1x2x128xf32> to vector<1x1x128xf32>
    %20 = vector.shape_cast %19 : vector<1x1x128xf32> to vector<1x1x1x128xf32>
    %c0_11 = arith.constant 0 : index
    %c0_12 = arith.constant 0 : index
    %c0_13 = arith.constant 0 : index
    %c0_14 = arith.constant 0 : index
    %21 = vector.load %arg4[%c0_11, %c0_12, %c0_13, %c0_14] : memref<1x1x1x128xf32, #tpu.memory_space<vmem>>, vector<1x1x1x128xf32>
    tpu.vector_store %arg4[%c0_11, %c0_12, %c0_13, %c0_14], %20 {strides = array<i32>} : memref<1x1x1x128xf32, #tpu.memory_space<vmem>>, vector<1x1x1x128xf32>,
    return
  }
  func.func @transform_0(%arg0: i32, %arg1: i32) -> (i32, i32, i32, i32) {
    %c0_i32 = arith.constant 0 : i32
    %c0_i32_0 = arith.constant 0 : i32
    %c0_i32_1 = arith.constant 0 : i32
    return %arg0, %c0_i32, %arg1, %c0_i32_0 : i32, i32, i32, i32
  }
  func.func @transform_1(%arg0: i32, %arg1: i32) -> (i32, i32, i32, i32) {
    %c0_i32 = arith.constant 0 : i32
    %c0_i32_0 = arith.constant 0 : i32
    %c0_i32_1 = arith.constant 0 : i32
    return %arg0, %c0_i32, %arg1, %c0_i32_0 : i32, i32, i32, i32
  }
  func.func @transform_2(%arg0: i32, %arg1: i32) -> (i32, i32, i32, i32) {
    %c0_i32 = arith.constant 0 : i32
    %c0_i32_0 = arith.constant 0 : i32
    %c0_i32_1 = arith.constant 0 : i32
    return %arg0, %arg1, %c0_i32, %c0_i32_0 : i32, i32, i32, i32
  }
}

</mosaic_0001>

<bundles_post_ra>
// kernel: tpu_custom_call.1
= control target key start
LH: loop header
LB: loop body
LE: loop exit
PB: predicated region body
PF: predicated region fallthrough
CT: control target
= control target key end

     0   :  { %7 = vsyncpa [#allocation3], 0  ;;  %s807_s0 = inlined_call_operand.hbm [shape: f32[2,4,2,128], index: 0, kind: input, shape index: {}]   ;;  %s808_s1 = inlined_call_operand.hbm [shape: s32[2,1,2,128], index: 1, kind: input, shape index: {}]   ;;  %s809_s2 = inlined_call_operand.hbm [shape: f32[2,1,1,128], index: 2, kind: output, shape index: {}]  }
   0x1   :  { %9 = vsyncpa [#allocation3 + $0x1], 0 }
   0x2   :  { %10 = vsyncpa [#allocation6], 0 }
   0x3   :  { %12 = vsyncpa [#allocation6 + $0x1], 0 }
   0x4   :  { %13 = vsyncpa [#allocation4], 0 }
   0x5   :  { %15 = vsyncpa [#allocation4 + $0x1], 0  ;;  %s655_s9 = smov 0   ;;  %s657_s10 = smov 0  }
   0x6   :  { %s659_s11 = smov 0   ;;  %s661_s12 = smov 0  }
   0x7   :  { %s663_s13 = smov 0   ;;  %s665_s14 = smov 0  }
   0x8 LB: > { %s396_s15 = sadd.s32 4294967295, %s636_s14   ;;  %s397_s16 = sadd.s32 4294967294, %s636_s14   ;;  %s636_s14 = sphi %s665_s14, %s21_s14   ;;  %s632_s13 = sphi %s663_s13, %s819_s13   ;;  %s628_s12 = sphi %s661_s12, %s818_s12   ;;  %s624_s11 = sphi %s659_s11, %s817_s11   ;;  %s620_s10 = sphi %s657_s10, %s816_s10   ;;  %s616_s9 = sphi %s655_s9, %s815_s9  }
   0x9   : > { %s33_s17 = sadd.s32 1, %s632_s13  ;;  %s42_s18 = sadd.s32 1, %s624_s11 }
   0xa   : > { %p35_p0 = scmp.ge.s32.totalorder %s33_s17, 2  ;;  %p49_p1 = scmp.ne.s32.totalorder %s624_s11, %s620_s10 }
   0xb   : > { %p50_p2 = scmp.eq.s32.totalorder %s636_s14, 0  ;;  %p55_p3 = scmp.ne.s32.totalorder %s620_s10, %s616_s9 }
   0xc   : > { %s821_s17 = smov (%p35_p0, %s33_s17), 0  ;;  %p56_p5 = scmp.eq.s32.totalorder %s396_s15, 0 }
   0xd   : > { %p696_p4 = por %p50_p2, %p49_p1  ;;  %s37_s20 = ssub.s32 %s632_s13, %s821_s17 }
   0xe   : > { %p109_p6 = scmp.eq.s32.totalorder %s396_s15, 1  ;;  %p40_p7 = scmp.eq.s32.totalorder %s37_s20, 0 }
   0xf   : > { %p702_p8 = por %p56_p5, %p55_p3  ;;  %p115_p10 = scmp.eq.s32.totalorder %s397_s16, 1 }
  0x10   : > { %p706_p9 = por %p109_p6, %p49_p1  ;;  %p399_p12 = scmp.ge.s32.totalorder %s636_s14, 2 }
  0x11   : > { %s711_s23 = scalar_select %p40_p7, %s624_s11, %s42_s18  }
  0x12   : > { %p713_p11 = por %p115_p10, %p55_p3  ;;  %p428_p13 = scmp.lt.s32.totalorder %s636_s14, 2 }
  0x13   : > { %s135_s25 = sand.u32 1, %s624_s11   ;;  %s410_s27 = sshll.u32 %s632_s13, 3 }
  0x14   : > { %s400_s26 = sshll.u32 %s135_s25, 3  ;;  %s145_s30 = scalar_lea.hbm %s807_s0, %s410_s27 }
  0x15   : > { %s139_s3 = scalar_lea.vmem [#allocation2], %s400_s26  ;;  %s146_s5 = sshll.u32 %s145_s30, 4  ;;  %s147_s5 = int_to_ptr.hbm [resolvable:$true] %s146_s5 }
  0x16   : > { %s148_s4 = sshll.u32 %s139_s3, 4  ;;  %p726_p0 = pnand %p428_p13, %p696_p4  ;;  %s149_s4 = int_to_ptr.vmem [resolvable:$true] %s148_s4 }
  0x17   : > { %p405_p1 = scmp.ge.s32.totalorder %s636_s14, 1  ;;  %s136_s7 = scalar_lea.sflag [#allocation3], %s135_s25 }
  0x18   : > { %s638_s8 = smov 32   ;;  %s639_s15 = smov 2  }
  0x19   : > { %420 = dma.hbm_to_vmem [thread:$0]  (!%p726_p0), %s147_s5, 128, %s149_s4, %s136_s7, %s638_s8, %s638_s8, %s639_s15  }
  0x1a   : > { %p176_p2 = scmp.lt.s32.totalorder %s636_s14, 3  ;;  %s403_s16 = sshll.u32 %s135_s25, 1 }
  0x1b   : > { %s404_s18 = sshll.u32 %s632_s13, 1  ;;  %s162_s27 = scalar_lea.vmem [#allocation5], %s403_s16 }
  0x1c   : > { %p177_p3 = pnand %p405_p1, %p176_p2  ;;  %s167_s19 = scalar_lea.hbm %s808_s1, %s404_s18 }
  0x1d   : > { %s171_s28 = sshll.u32 %s162_s27, 4  ;;  %s169_s29 = sshll.u32 %s167_s19, 4  ;;  %s172_s28 = int_to_ptr.vmem [resolvable:$true] %s171_s28  ;;  %s170_s29 = int_to_ptr.hbm [resolvable:$true] %s169_s29 }
  0x1e   : > { %s159_s30 = scalar_lea.sflag [#allocation6], %s135_s25  ;;  %180 = sbr.rel (%p177_p3) target bundleno = 94 (0x5e), region = 28 }
  0x1f   : > { %423 = dma.hbm_to_vmem [thread:$0]  (!%p726_p0), %s170_s29, 32, %s172_s28, %s159_s30  }
  0x20   : > { %s741_s3 = sand.u32 (!%p177_p3), 1, %s620_s10  }
  0x21   : > { %s406_s4 = sshll.u32 (!%p177_p3), %s741_s3, 3  ;;  %s183_s5 = scalar_lea.sflag (!%p177_p3), [#allocation3], %s741_s3 }
  0x22   : > { %s186_s7 = scalar_lea.vmem (!%p177_p3), [#allocation2], %s406_s4 }
  0x23   : > { %603 = dma.done.wait (%p702_p8), %s183_s5, 128  }
  0x24   : > { %605 = vsyncadd (%p702_p8), %s183_s5, 4294967168  ;;  %s407_s25 = sshll.u32 %s741_s3, 1  ;;  %s193_s6 = scalar_lea.sflag [#allocation6], %s741_s3 }
  0x25   : > { %s196_s8 = scalar_lea.vmem [#allocation5], %s407_s25 }
  0x26   : > { %607 = dma.done.wait (%p702_p8), %s193_s6, 32  }
  0x27   : > { %609 = vsyncadd (%p702_p8), %s193_s6, 4294967264  ;;  %vm227_vm0 = vcmask 1041408   ;;  %v222_v0 = vld [vmem:[%s186_s7] sm:$0x3]  ;;  %v223_v1 = vld [vmem:[%s186_s7 + $0x2] sm:$0x3]  ;;  %s291_s16 = scalar_lea.hbm %s809_s2, %s628_s12 }
  0x28   : > { %v224_v2 = vld [vmem:[%s186_s7 + $0x4] sm:$0x3]  ;;  %v225_v3 = vld [vmem:[%s186_s7 + $0x6] sm:$0x3]  ;;  %v228_v4 = vsel %vm227_vm0, %v222_v0, -inf  ;;  %v229_v5 = vsel %vm227_vm0, %v223_v1, -inf }
  0x29   : > { %v230_v6 = vsel %vm227_vm0, %v224_v2, -inf  ;;  %v231_v7 = vsel %vm227_vm0, %v225_v3, -inf  ;;  %v232_v8 = vmax.f32 %v228_v4, %v229_v5  ;;  %v226_v19 = vld [vmem:[%s196_s8] sm:$0x3]  ;;  %s221_s18 = scalar_lea.vmem [#allocation7], %s741_s3  ;;  %s295_s26 = sshll.u32 %s291_s16, 4  ;;  %s296_s26 = int_to_ptr.hbm [resolvable:$true] %s295_s26 }
  0x2a   : > { %v233_v9 = vmax.f32 %v230_v6, %v231_v7  ;;  %vm257_vm1 = vcmp.eq.s32.totalorder %v226_v19, 0  ;;  %vm258_vm2 = vcmp.eq.s32.totalorder %v226_v19, 1  ;;  %vm259_vm3 = vcmp.eq.s32.totalorder %v226_v19, 2  ;;  %s293_s20 = sshll.u32 %s221_s18, 4  ;;  %s282_s19 = scalar_lea.sflag [#allocation4], %s741_s3  ;;  %s294_s20 = int_to_ptr.vmem [resolvable:$true] %s293_s20 }
  0x2b   : > { %v261_v25 = vsel %vm257_vm1, %v222_v0, 0.0  ;;  %v262_v26 = vsel %vm258_vm2, %v223_v1, 0.0  ;;  %v263_v34 = vsel %vm259_vm3, %v224_v2, 0.0  ;;  %vm260_vm4 = vcmp.eq.s32.totalorder %v226_v19, 3  ;;  %s564_s27 = sshra.s32 %s296_s26, 4  ;;  %s570_s12 = scalar_lea.hbm %s809_s2, 2  ;;  %s565_s27 = int_to_ptr.hbm [resolvable:$true] %s564_s27 }
  0x2c   : > { %v234_v10 = vmax.f32 %v232_v8, %v233_v9  ;;  %v265_v32 = vsel %vm227_vm0, %v261_v25, 0.0  ;;  %v266_v33 = vsel %vm227_vm0, %v262_v26, 0.0  ;;  %v268_v37 = vsel %vm227_vm0, %v263_v34, 0.0  ;;  %s566_s28 = scalar_lea.hbm %s565_s27, 1  ;;  %p571_p7 = scmp.lt.s32.totalorder %s565_s27, %s809_s2 }
  0x2d   : > { %v267_v36 = vadd.f32 %v266_v33, %v265_v32  ;;  %v264_v38 = vsel %vm260_vm4, %v225_v3, 0.0  ;;  %p567_p4 = scmp.ne.s32.totalorder %s565_s27, %s566_s28  ;;  %p572_p8 = scmp.lt.s32.totalorder %s570_s12, %s566_s28 }
  0x2e   : > { %v235_v11 = vsub.f32 %v222_v0, %v234_v10  ;;  %v236_v12 = vsub.f32 %v223_v1, %v234_v10  ;;  %v237_v13 = vsub.f32 %v224_v2, %v234_v10  ;;  %v238_v14 = vsub.f32 %v225_v3, %v234_v10 }
  0x2f   : > { %v269_v39 = vadd.f32 %v268_v37, %v267_v36  ;;  %v270_v40 = vsel %vm227_vm0, %v264_v38, 0.0  ;;  %p568_p5 = pnand %p567_p4, %p706_p9  ;;  %p573_p10 = por %p572_p8, %p571_p7 }
  0x30   : > { %v239_v15 = vmul.f32 1.442695, %v235_v11  ;;  %v241_v16 = vmul.f32 1.442695, %v236_v12  ;;  %v243_v17 = vmul.f32 1.442695, %v237_v13 }
  0x31   : > { %v245_v18 = vmul.f32 1.442695, %v238_v14  ;;  %v271_v43 = vadd.f32 %v270_v40, %v269_v39  ;;  %p569_p6 = pneg %p568_p5 }
  0x32   : > { %480 = vpow2.f32 %v239_v15 }
  0x33   : > { %482 = vpow2.f32 %v241_v16  ;;  %p574_p13 = pnand %p573_p10, %p569_p6 }
  0x34   : > { %484 = vpow2.f32 %v243_v17 }
  0x35   : > { %486 = vpow2.f32 %v245_v18 }
  0x38   : > { %v481_v20 = vpop.eup %480 }
  0x39   : > { %v483_v21 = vpop.eup %482  ;;  %v247_v22 = vsel %vm227_vm0, %v481_v20, 0.0 }
  0x3a   : > { %v485_v23 = vpop.eup %484  ;;  %v248_v24 = vsel %vm227_vm0, %v483_v21, 0.0 }
  0x3b   : > { %v487_v27 = vpop.eup %486  ;;  %v249_v28 = vadd.f32 %v248_v24, %v247_v22  ;;  %v250_v29 = vsel %vm227_vm0, %v485_v23, 0.0 }
  0x3c   : > { %v252_v30 = vsel %vm227_vm0, %v487_v27, 0.0 }
  0x3d   : > { %v251_v31 = vadd.f32 %v250_v29, %v249_v28 }
  0x3f   : > { %v253_v35 = vadd.f32 %v252_v30, %v251_v31 }
  0x41   : > { %488 = vlog2.f32 %v253_v35 }
  0x47   : > { %v489_v41 = vpop.eup %488 }
  0x48   : > { %v255_v42 = vmul.f32 0.6931472, %v489_v41 }
  0x4a   : > { %v256_v44 = vadd.f32 %v255_v42, %v234_v10 }
  0x4c   : > { %v272_v45 = vsub.f32 %v256_v44, %v271_v43 }
  0x4e   : > { %v273_v46 = vsel %vm227_vm0, %v272_v45, 0.0 }
  0x4f   : > { %v274_v47 = vrot.slane %v273_v46, 4 }
  0x51   : > { %v275_v48 = vadd.f32 %v274_v47, %v273_v46 }
  0x53   : > { %v276_v49 = vrot.slane %v275_v48, 2 }
  0x55   : > { %v277_v50 = vadd.f32 %v276_v49, %v275_v48 }
  0x57   : > { %v278_v51 = vrot.slane %v277_v50, 1 }
  0x59   : > { %v279_v52 = vadd.f32 %v278_v51, %v277_v50 }
  0x5b   : > { %280 = vst [vmem:[%s221_s18] sm:$0x1] %v279_v52 }
  0x5c   : > { %577 = shalt.err (!%p574_p13)
}
  0x5d   : > { %415 = dma.vmem_to_hbm [thread:$0]  (%p706_p9), %s294_s20, 16, %s296_s26, %s282_s19  }
  0x5e PF: > { %s307_s3 = sand.u32 1, %s616_s9   ;;  %p425_p0 = pnand %p399_p12, %p713_p11 }
  0x5f   : > { %s308_s7 = scalar_lea.sflag [#allocation4], %s307_s3 }
  0x60   : > { %p426_p1 = pneg %p425_p0 }
  0x62   : > { %611 = dma.done.wait (%p426_p1), %s308_s7, 16  }
  0x63   : > { %613 = vsyncadd (%p426_p1), %s308_s7, 4294967280  ;;  %s21_s14 = sadd.s32 1, %s636_s14   ;;  %s815_s9 = smov %s620_s10 }
  0x64   : > { %p18_p2 = scmp.ge.s32.totalorder %s21_s14, 4   ;;  %s816_s10 = smov %s624_s11 }
  0x65   : > { %s817_s11 = smov %s711_s23  ;;  %s818_s12 = smov %s632_s13 }
  0x66   : > { %s819_s13 = smov %s821_s17  ;;  %20 = sbr.rel (!%p18_p2) target bundleno = 8 (0x8), region = 86 }
  0x6b   :  { %313 = vsyncpa [#allocation3], 1 }
  0x6c   :  { %315 = vsyncpa [#allocation3 + $0x1], 1 }
  0x6d   :  { %316 = vsyncpa [#allocation6], 1 }
  0x6e   :  { %318 = vsyncpa [#allocation6 + $0x1], 1 }
  0x6f   :  { %319 = vsyncpa [#allocation4], 1 }
  0x70   :  { %321 = vsyncpa [#allocation4 + $0x1], 1 }

</bundles_post_ra>
